<compile_context>
chip_gen: v7x
topology: tpu7x:2x2x1
jax: 0.10.0
libtpu: 0.0.40
codegen_flags: <defaults>
</compile_context>

<pallas_src>
import jax
import jax.numpy as jnp
from jax import lax
from jax.experimental import pallas as pl
from jax.experimental.pallas import tpu as pltpu

EPS = 1e-8  # matches the module default eps=1e-08 (not PyTorch's BN default 1e-5)


def _round_up(v, m):
    return (v + m - 1) // m * m


def linear_bn_act_kernel(x_ref, w_ref, gamma_ref, beta_ref, o_ref, acc_ref):
    # x_ref:     (N, TK)   bf16   (full batch resident, K tile)
    # w_ref:     (TN, TK)  bf16   (PyTorch (out_feat, in_feat) layout tile)
    # gamma_ref: (1, TN)   f32
    # beta_ref:  (1, TN)   f32
    # o_ref:     (N, TN)   f32
    # acc_ref:   (N, TN)   f32 VMEM scratch, resident across the K grid axis
    k = pl.program_id(1)

    @pl.when(k == 0)
    def _():
        acc_ref[...] = jnp.zeros_like(acc_ref)

    # Linear (no bias): contract x's in_feat axis with W's in_feat axis on the
    # MXU, accumulating in fp32.  No transpose of W needed.
    acc_ref[...] += lax.dot_general(
        x_ref[...], w_ref[...],
        dimension_numbers=(((1,), (1,)), ((), ())),
        preferred_element_type=jnp.float32,
    )

    @pl.when(k == pl.num_programs(1) - 1)
    def _():
        y = acc_ref[...]
        # BatchNorm1d training-mode forward: biased batch statistics over axis 0.
        mean = jnp.mean(y, axis=0, keepdims=True)
        centered = y - mean
        var = jnp.mean(centered * centered, axis=0, keepdims=True)
        # Fused affine: y_bn = y * scale + shift
        scale = gamma_ref[...] * lax.rsqrt(var + EPS)
        shift = beta_ref[...] - mean * scale
        # Activation (ReLU).
        o_ref[...] = jnp.maximum(y * scale + shift, 0.0).astype(o_ref.dtype)


def linear_bn_act(x, weight, gamma, beta):
    """x: (N, in_feat); weight: (out_feat, in_feat) PyTorch layout (no host
    transpose); gamma/beta: (out_feat,).  Returns (N, out_feat) float32."""
    n, in_feat = x.shape
    out_feat = weight.shape[0]

    # Lane-dense, MXU-friendly tiles (128-aligned; 256/512 for larger shapes).
    tn = 256 if out_feat >= 256 else 128
    tk = 512 if in_feat >= 512 else (256 if in_feat >= 256 else 128)
    out_pad = _round_up(out_feat, tn)
    in_pad = _round_up(in_feat, tk)

    # bf16 matmul operands; fp32 accumulation + BN stats inside the kernel.
    xb = x.astype(jnp.bfloat16)
    wb = weight.astype(jnp.bfloat16)
    if in_pad != in_feat:
        xb = jnp.pad(xb, ((0, 0), (0, in_pad - in_feat)))
        wb = jnp.pad(wb, ((0, 0), (0, in_pad - in_feat)))
    if out_pad != out_feat:
        wb = jnp.pad(wb, ((0, out_pad - out_feat), (0, 0)))
    gamma2 = jnp.pad(gamma.astype(jnp.float32), (0, out_pad - out_feat),
                     constant_values=1.0).reshape(1, out_pad)
    beta2 = jnp.pad(beta.astype(jnp.float32),
                    (0, out_pad - out_feat)).reshape(1, out_pad)

    grid = (out_pad // tn, in_pad // tk)  # (out tiles [parallel], K tiles [arbitrary])

    # Rough VMEM need: double-buffered bf16 x/W tiles + gamma/beta + fp32
    # accumulator + double-buffered fp32 output tile; 2x headroom, capped so it
    # also fits v7x's 64 MiB physical VMEM.
    vmem_est = (2 * (n * tk + tk * tn) * 2
                + 2 * 2 * tn * 4
                + n * tn * 4
                + 2 * n * tn * 4)
    vmem_limit = int(min(max(2 * vmem_est, 32 * 1024 * 1024), 48 * 1024 * 1024))

    out = pl.pallas_call(
        linear_bn_act_kernel,
        out_shape=jax.ShapeDtypeStruct((n, out_pad), jnp.float32),
        grid_spec=pltpu.PrefetchScalarGridSpec(
            num_scalar_prefetch=0,
            grid=grid,
            in_specs=[
                pl.BlockSpec((n, tk), lambda j, k: (0, k)),   # x
                pl.BlockSpec((tn, tk), lambda j, k: (j, k)),  # W (out, in)
                pl.BlockSpec((1, tn), lambda j, k: (0, j)),   # gamma
                pl.BlockSpec((1, tn), lambda j, k: (0, j)),   # beta
            ],
            out_specs=pl.BlockSpec((n, tn), lambda j, k: (0, j)),
            scratch_shapes=[pltpu.VMEM((n, tn), jnp.float32)],
        ),
        compiler_params=pltpu.CompilerParams(
            dimension_semantics=("parallel", "arbitrary"),
            vmem_limit_bytes=vmem_limit,
        ),
    )(xb, wb, gamma2, beta2)

    return out[:, :out_feat]


def _reference(x, weight, gamma, beta):
    # Reference on the same bf16-rounded operands (fp32 math) so it tracks the
    # kernel's bf16-input / fp32-accumulation matmul.
    xb = x.astype(jnp.bfloat16).astype(jnp.float32)
    wb = weight.astype(jnp.bfloat16).astype(jnp.float32)
    y = xb @ wb.T
    mean = jnp.mean(y, axis=0, keepdims=True)
    var = jnp.mean((y - mean) ** 2, axis=0, keepdims=True)
    y = (y - mean) / jnp.sqrt(var + EPS)
    y = y * gamma[None, :] + beta[None, :]
    return jnp.maximum(y, 0.0)


if __name__ == "__main__":
    key = jax.random.PRNGKey(0)
    k_x, k_w, k_g, k_b = jax.random.split(key, 4)

    batch, in_feat, out_feat = 8, 32, 64

    x = jax.random.normal(k_x, (batch, in_feat), dtype=jnp.float32)
    # PyTorch-like Linear init scale.
    bound = 1.0 / jnp.sqrt(in_feat)
    weight = jax.random.uniform(
        k_w, (out_feat, in_feat), minval=-bound, maxval=bound, dtype=jnp.float32
    )
    # BatchNorm affine params perturbed from (1, 0) so the scale/shift path is exercised.
    gamma = 1.0 + 0.1 * jax.random.normal(k_g, (out_feat,), dtype=jnp.float32)
    beta = 0.1 * jax.random.normal(k_b, (out_feat,), dtype=jnp.float32)

    out = linear_bn_act(x, weight, gamma, beta)
    out = jax.block_until_ready(out)

    ref = _reference(x, weight, gamma, beta)
    assert out.shape == (batch, out_feat)
    assert jnp.allclose(out, ref, atol=1e-4, rtol=1e-4), "mismatch vs reference"

    print("KERNEL_OK")
</pallas_src>

<mosaic_0001>
module attributes {stable_mosaic.version = 11 : i64} {
  func.func @linear_bn_act_kernel(%arg0: i32, %arg1: i32, %arg2: memref<8x128xbf16, #tpu.memory_space<vmem>>, %arg3: memref<128x128xbf16, #tpu.memory_space<vmem>>, %arg4: memref<1x128xf32, #tpu.memory_space<vmem>>, %arg5: memref<1x128xf32, #tpu.memory_space<vmem>>, %arg6: memref<8x128xf32, #tpu.memory_space<vmem>>, %arg7: memref<8x128xf32, #tpu.memory_space<vmem>>) attributes {dimension_semantics = [#tpu.dimension_semantics<parallel>, #tpu.dimension_semantics<arbitrary>], iteration_bounds = array<i64: 1, 1>, scalar_prefetch = 0 : i64, scratch_operands = 1 : i64, tpu.core_type = #tpu.core_type<tc>, window_params = [{transform_indices = @transform_0, window_bounds = array<i64: 8, 128>}, {transform_indices = @transform_1, window_bounds = array<i64: 128, 128>}, {transform_indices = @transform_2, window_bounds = array<i64: 1, 128>}, {transform_indices = @transform_3, window_bounds = array<i64: 1, 128>}, {transform_indices = @transform_4, window_bounds = array<i64: 8, 128>}]} {
    %c0_i32 = arith.constant 0 : i32
    %0 = arith.cmpi eq, %arg1, %c0_i32 : i32
    %1 = arith.extui %0 : i1 to i32
    %c0_i32_0 = arith.constant 0 : i32
    %2 = arith.cmpi ne, %1, %c0_i32_0 : i32
    scf.if %2 {
      %cst_10 = arith.constant 0.000000e+00 : f32
      %12 = vector.broadcast %cst_10 : f32 to vector<8x128xf32>
      %c0_11 = arith.constant 0 : index
      %c0_12 = arith.constant 0 : index
      %13 = vector.load %arg7[%c0_11, %c0_12] : memref<8x128xf32, #tpu.memory_space<vmem>>, vector<8x128xf32>
      tpu.vector_store %arg7[%c0_11, %c0_12], %12 {strides = array<i32>} : memref<8x128xf32, #tpu.memory_space<vmem>>, vector<8x128xf32>,
    } else {
    }
    %c0 = arith.constant 0 : index
    %c0_1 = arith.constant 0 : index
    %3 = vector.load %arg7[%c0, %c0_1] : memref<8x128xf32, #tpu.memory_space<vmem>>, vector<8x128xf32>
    %c0_2 = arith.constant 0 : index
    %c0_3 = arith.constant 0 : index
    %4 = vector.load %arg2[%c0_2, %c0_3] : memref<8x128xbf16, #tpu.memory_space<vmem>>, vector<8x128xbf16>
    %c0_4 = arith.constant 0 : index
    %c0_5 = arith.constant 0 : index
    %5 = vector.load %arg3[%c0_4, %c0_5] : memref<128x128xbf16, #tpu.memory_space<vmem>>, vector<128x128xbf16>
    %cst = arith.constant dense<0.000000e+00> : vector<8x128xf32>
    %6 = tpu.matmul %4, %5, %cst {dimension_numbers = #tpu.dot_dimension_numbers<[1], [1], [0], [0], [0, 0, 1, 0], [], []>} : vector<8x128xbf16>, vector<128x128xbf16>, vector<8x128xf32> -> vector<8x128xf32>
    %7 = arith.addf %3, %6 : vector<8x128xf32>
    %c0_6 = arith.constant 0 : index
    %c0_7 = arith.constant 0 : index
    %8 = vector.load %arg7[%c0_6, %c0_7] : memref<8x128xf32, #tpu.memory_space<vmem>>, vector<8x128xf32>
    tpu.vector_store %arg7[%c0_6, %c0_7], %7 {strides = array<i32>} : memref<8x128xf32, #tpu.memory_space<vmem>>, vector<8x128xf32>,
    %c0_i32_8 = arith.constant 0 : i32
    %9 = arith.cmpi eq, %arg1, %c0_i32_8 : i32
    %10 = arith.extui %9 : i1 to i32
    %c0_i32_9 = arith.constant 0 : i32
    %11 = arith.cmpi ne, %10, %c0_i32_9 : i32
    scf.if %11 {
      %c0_10 = arith.constant 0 : index
      %c0_11 = arith.constant 0 : index
      %12 = vector.load %arg7[%c0_10, %c0_11] : memref<8x128xf32, #tpu.memory_space<vmem>>, vector<8x128xf32>
      %cst_12 = arith.constant dense<0.000000e+00> : vector<128xf32>
      %13 = vector.multi_reduction <add>, %12, %cst_12 [0] : vector<8x128xf32> to vector<128xf32>
      %14 = vector.shape_cast %13 : vector<128xf32> to vector<1x128xf32>
      %cst_13 = arith.constant 8.000000e+00 : f32
      %15 = vector.broadcast %cst_13 : f32 to vector<1x128xf32>
      %16 = arith.divf %14, %15 : vector<1x128xf32>
      %17 = vector.broadcast %16 : vector<1x128xf32> to vector<8x128xf32>
      %18 = arith.subf %12, %17 : vector<8x128xf32>
      %19 = arith.mulf %18, %18 : vector<8x128xf32>
      %cst_14 = arith.constant dense<0.000000e+00> : vector<128xf32>
      %20 = vector.multi_reduction <add>, %19, %cst_14 [0] : vector<8x128xf32> to vector<128xf32>
      %21 = vector.shape_cast %20 : vector<128xf32> to vector<1x128xf32>
      %cst_15 = arith.constant 8.000000e+00 : f32
      %22 = vector.broadcast %cst_15 : f32 to vector<1x128xf32>
      %23 = arith.divf %21, %22 : vector<1x128xf32>
      %c0_16 = arith.constant 0 : index
      %c0_17 = arith.constant 0 : index
      %24 = vector.load %arg4[%c0_16, %c0_17] : memref<1x128xf32, #tpu.memory_space<vmem>>, vector<1x128xf32>
      %cst_18 = arith.constant 9.99999993E-9 : f32
      %25 = vector.broadcast %cst_18 : f32 to vector<1x128xf32>
      %26 = arith.addf %23, %25 : vector<1x128xf32>
      %27 = math.rsqrt %26 : vector<1x128xf32>
      %28 = arith.mulf %24, %27 : vector<1x128xf32>
      %c0_19 = arith.constant 0 : index
      %c0_20 = arith.constant 0 : index
      %29 = vector.load %arg5[%c0_19, %c0_20] : memref<1x128xf32, #tpu.memory_space<vmem>>, vector<1x128xf32>
      %30 = arith.mulf %16, %28 : vector<1x128xf32>
      %31 = arith.subf %29, %30 : vector<1x128xf32>
      %32 = vector.broadcast %28 : vector<1x128xf32> to vector<8x128xf32>
      %33 = arith.mulf %12, %32 : vector<8x128xf32>
      %34 = vector.broadcast %31 : vector<1x128xf32> to vector<8x128xf32>
      %35 = arith.addf %33, %34 : vector<8x128xf32>
      %cst_21 = arith.constant 0.000000e+00 : f32
      %36 = vector.broadcast %cst_21 : f32 to vector<8x128xf32>
      %37 = arith.maximumf %35, %36 : vector<8x128xf32>
      %c0_22 = arith.constant 0 : index
      %c0_23 = arith.constant 0 : index
      %38 = vector.load %arg6[%c0_22, %c0_23] : memref<8x128xf32, #tpu.memory_space<vmem>>, vector<8x128xf32>
      tpu.vector_store %arg6[%c0_22, %c0_23], %37 {strides = array<i32>} : memref<8x128xf32, #tpu.memory_space<vmem>>, vector<8x128xf32>,
    } else {
    }
    return
  }
  func.func @transform_0(%arg0: i32, %arg1: i32) -> (i32, i32) {
    %c0_i32 = arith.constant 0 : i32
    %c0_i32_0 = arith.constant 0 : i32
    return %c0_i32, %arg1 : i32, i32
  }
  func.func @transform_1(%arg0: i32, %arg1: i32) -> (i32, i32) {
    %c0_i32 = arith.constant 0 : i32
    return %arg0, %arg1 : i32, i32
  }
  func.func @transform_2(%arg0: i32, %arg1: i32) -> (i32, i32) {
    %c0_i32 = arith.constant 0 : i32
    %c0_i32_0 = arith.constant 0 : i32
    return %c0_i32, %arg0 : i32, i32
  }
  func.func @transform_3(%arg0: i32, %arg1: i32) -> (i32, i32) {
    %c0_i32 = arith.constant 0 : i32
    %c0_i32_0 = arith.constant 0 : i32
    return %c0_i32, %arg0 : i32, i32
  }
  func.func @transform_4(%arg0: i32, %arg1: i32) -> (i32, i32) {
    %c0_i32 = arith.constant 0 : i32
    %c0_i32_0 = arith.constant 0 : i32
    return %c0_i32, %arg0 : i32, i32
  }
}

</mosaic_0001>

<bundles_post_ra>
// kernel: tpu_custom_call.1
= control target key start
LH: loop header
LB: loop body
LE: loop exit
PB: predicated region body
PF: predicated region fallthrough
CT: control target
= control target key end

     0   :  { %9 = vsyncpa [#allocation4], 0  ;;  %s425_s0 = inlined_call_operand.hbm [shape: bf16[8,128], index: 0, kind: input, shape index: {}]   ;;  %s426_s1 = inlined_call_operand.hbm [shape: bf16[128,128], index: 1, kind: input, shape index: {}]   ;;  %s427_s2 = inlined_call_operand.vmem [shape: f32[1,128], index: 2, kind: input, shape index: {}]   ;;  %s428_s3 = inlined_call_operand.vmem [shape: f32[1,128], index: 3, kind: input, shape index: {}]   ;;  %s429_s4 = inlined_call_operand.hbm [shape: f32[8,128], index: 4, kind: output, shape index: {}]  }
   0x1   :  { %10 = vsyncpa [#allocation7], 0 }
   0x2   :  { %11 = vsyncpa [#allocation5], 0  ;;  %s344_s15 = smov [#allocation3]   ;;  %s345_s17 = smov [#allocation6]  }
   0x3   :  { %s18_s16 = sshll.u32 %s344_s15, 4  ;;  %s27_s18 = sshll.u32 %s345_s17, 4  ;;  %s19_s16 = int_to_ptr.vmem [resolvable:$true] %s18_s16  ;;  %s376_s18 = int_to_ptr.vmem [resolvable:$true] %s27_s18 }
   0x4   :  { %s272_s21 = scalar_lea.hbm %s425_s0, 64 }
   0x5   :  { %p273_p0 = scmp.ne.s32.totalorder %s425_s0, %s272_s21  ;;  %p276_p1 = scmp.lt.u32.totalorder %s272_s21, %s425_s0 }
   0x7   :  { %p278_p2 = pnand %p276_p1, %p273_p0 }
   0x9   :  { %281 = shalt.err (!%p278_p2)
}
   0xa   :  { %s282_s26 = scalar_lea.vmem %s19_s16, 64  ;;  %p287_p4 = scmp.lt.s32.totalorder %s19_s16, %s19_s16 }
   0xb   :  { %p283_p3 = scmp.ne.s32.totalorder %s19_s16, %s282_s26  ;;  %p288_p5 = scmp.lt.s32.totalorder %s282_s26, %s282_s26 }
   0xd   :  { %p289_p6 = por %p288_p5, %p287_p4 }
   0xf   :  { %p290_p7 = pnand %p289_p6, %p283_p3 }
  0x11   :  { %293 = shalt.err (!%p290_p7)
}
  0x12   :  { %21 = dma.hbm_to_vmem [thread:$0]  %s425_s0, 64, %s19_s16, [#allocation4]  }
  0x13   :  { %s294_s5 = scalar_lea.hbm %s426_s1, 1024 }
  0x14   :  { %p295_p8 = scmp.ne.s32.totalorder %s426_s1, %s294_s5  ;;  %p298_p9 = scmp.lt.u32.totalorder %s294_s5, %s426_s1 }
  0x16   :  { %p300_p10 = pnand %p298_p9, %p295_p8 }
  0x18   :  { %303 = shalt.err (!%p300_p10)
}
  0x19   :  { %s304_s10 = scalar_lea.vmem %s376_s18, 1024  ;;  %p309_p12 = scmp.lt.s32.totalorder %s376_s18, %s376_s18 }
  0x1a   :  { %p305_p11 = scmp.ne.s32.totalorder %s376_s18, %s304_s10  ;;  %p310_p13 = scmp.lt.s32.totalorder %s304_s10, %s304_s10 }
  0x1c   :  { %p311_p0 = por %p310_p13, %p309_p12 }
  0x1e   :  { %p312_p1 = pnand %p311_p0, %p305_p11 }
  0x20   :  { %315 = shalt.err (!%p312_p1)
}
  0x21   :  { %s346_s0 = smov 64   ;;  %s347_s11 = smov 4  }
  0x22   :  { %33 = dma.hbm_to_vmem [thread:$0]  %s426_s1, 1024, %s376_s18, [#allocation7], %s346_s0, %s346_s0, %s347_s11  }
  0x23   :  { %338 = dma.done.wait [#allocation4], 64  }
  0x24   :  { %339 = vsyncadd [#allocation4], 4294967232 }
  0x25   :  { %340 = dma.done.wait [#allocation7], 1024  }
  0x26   :  { %341 = vsyncadd [#allocation7], 4294966272  ;;  %v348_v0 = vmov 0.0   ;;  %vm349_vm0 = vmmov 0   ;;  %v262_v1 = vld [vmem:[#allocation6] sm:$0xff]   ;;  %v263_v2 = vld [vmem:[#allocation6 + $0x8] sm:$0xff]   ;;  %v187_v31 = vlaneseq }
  0x27   :  { %235 = vmatprep.subr.bf16.mxu0 %v348_v0  ;;  %251 = vmatprep.mubr.msk.bf16.mxu0 %vm349_vm0, %v348_v0  ;;  %v264_v3 = vld [vmem:[#allocation6 + $0x10] sm:$0xff]   ;;  %v265_v4 = vld [vmem:[#allocation6 + $0x18] sm:$0xff]   ;;  %v266_v5 = vld [vmem:[#allocation6 + $0x20] sm:$0xff]   ;;  %s350_s17 = smov [#allocation8]  }
  0x28   :  { %236 = vmatpush3.bf16.xpose.msra.mxu0 %v262_v1  ;;  %v267_v6 = vld [vmem:[#allocation6 + $0x28] sm:$0xff]   ;;  %v268_v7 = vld [vmem:[#allocation6 + $0x30] sm:$0xff]   ;;  %v269_v8 = vld [vmem:[#allocation6 + $0x38] sm:$0xff]   ;;  %v188_v32 = vshrl.u32 %v187_v31, 7  ;;  %s208_s18 = sshll.u32 %s350_s17, 4  ;;  %s209_s18 = int_to_ptr.vmem [resolvable:$true] %s208_s18 }
  0x29   :  { %237 = vmatprep.subr.bf16.mxu0 %v348_v0  ;;  %v51_v9 = vld [vmem:[#allocation3] sm:$0xf]  ;;  %s316_s19 = scalar_lea.vmem %s209_s18, 128  ;;  %p321_p3 = scmp.lt.s32.totalorder %s209_s18, %s209_s18 }
  0x2a   :  { %v179_v33 = vld [vmem:[%s427_s2] sm:$0x1]  ;;  %v189_v34 = vsub.s32 0, %v188_v32  ;;  %p317_p2 = scmp.ne.s32.totalorder %s209_s18, %s316_s19  ;;  %p322_p4 = scmp.lt.s32.totalorder %s316_s19, %s316_s19 }
  0x2b   :  { %v183_v37 = vld [vmem:[%s428_s3] sm:$0x1] }
  0x2c   :  { %p323_p5 = por %p322_p4, %p321_p3 }
  0x2e   :  { %p324_p6 = pnand %p323_p5, %p317_p2 }
  0x30   :  { %238 = vmatpush3.bf16.xpose.msra.mxu0 %v263_v2 }
  0x31   :  { %239 = vmatprep.subr.bf16.mxu0 %v348_v0 }
  0x38   :  { %240 = vmatpush3.bf16.xpose.msra.mxu0 %v264_v3 }
  0x39   :  { %241 = vmatprep.subr.bf16.mxu0 %v348_v0 }
  0x40   :  { %242 = vmatpush3.bf16.xpose.msra.mxu0 %v265_v4 }
  0x41   :  { %243 = vmatprep.subr.bf16.mxu0 %v348_v0 }
  0x48   :  { %244 = vmatpush3.bf16.xpose.msra.mxu0 %v266_v5 }
  0x49   :  { %245 = vmatprep.subr.bf16.mxu0 %v348_v0 }
  0x50   :  { %246 = vmatpush3.bf16.xpose.msra.mxu0 %v267_v6 }
  0x51   :  { %247 = vmatprep.subr.bf16.mxu0 %v348_v0 }
  0x58   :  { %248 = vmatpush3.bf16.xpose.msra.mxu0 %v268_v7 }
  0x59   :  { %249 = vmatprep.subr.bf16.mxu0 %v348_v0 }
  0x60   :  { %250 = vmatpush3.bf16.xpose.msra.mxu0 %v269_v8 }
  0x67   :  { %252 = vmatmul.mubr.bf16.vlgmr.msra.gmra.mrb[0].mxu0 %v51_v9 }
 0x13a   :  { %v150_v10 = vpop.f32.mrb[0].mxu0 }
 0x13b   :  { %v162_v11 = vrot.slane %v150_v10, 4  ;;  %v253_v12 = vpop.f32.mrb[1].mxu0 }
 0x13c   :  { %v153_v13 = vpop.f32.mrb[2].mxu0 }
 0x13d   :  { %v163_v14 = vadd.f32 %v162_v11, %v150_v10  ;;  %v254_v15 = vpop.f32.mrb[3].mxu0 }
 0x13f   :  { %v164_v16 = vrot.slane %v163_v14, 2 }
 0x141   :  { %v165_v17 = vadd.f32 %v164_v16, %v163_v14 }
 0x143   :  { %v166_v18 = vrot.slane %v165_v17, 1 }
 0x145   :  { %v167_v19 = vadd.f32 %v166_v18, %v165_v17 }
 0x147   :  { %v169_v20 = vmul.f32 0.125, %v167_v19 }
 0x149   :  { %v170_v21 = vsub.f32 %v150_v10, %v169_v20 }
 0x14b   :  { %v171_v22 = vmul.f32 %v170_v21, %v170_v21 }
 0x14d   :  { %v172_v23 = vrot.slane %v171_v22, 4 }
 0x14f   :  { %v173_v24 = vadd.f32 %v172_v23, %v171_v22 }
 0x151   :  { %v174_v25 = vrot.slane %v173_v24, 2 }
 0x153   :  { %v175_v26 = vadd.f32 %v174_v25, %v173_v24 }
 0x155   :  { %v176_v27 = vrot.slane %v175_v26, 1 }
 0x157   :  { %v177_v28 = vadd.f32 %v176_v27, %v175_v26 }
 0x159   :  { %v178_v29 = vmul.f32 0.125, %v177_v28 }
 0x15b   :  { %v180_v30 = vadd.f32 1e-08, %v178_v29 }
 0x15d   :  { %270 = vrsqrt.f32 %v180_v30 }
 0x167   :  { %v271_v35 = vpop.eup %270 }
 0x168   :  { %v182_v36 = vmul.f32 %v271_v35, %v179_v33 }
 0x16a   :  { %v184_v38 = vmul.f32 %v182_v36, %v169_v20  ;;  %v190_v39 = vrot.slane %v182_v36, %v189_v34 }
 0x16c   :  { %v185_v40 = vsub.f32 %v183_v37, %v184_v38  ;;  %v192_v41 = vmul.f32 %v190_v39, %v150_v10 }
 0x16e   :  { %v197_v42 = vrot.slane %v185_v40, %v189_v34 }
 0x170   :  { %v199_v43 = vadd.f32 %v197_v42, %v192_v41 }
 0x172   :  { %v200_v44 = vmax.f32 %v199_v43, 0.0 }
 0x174   :  { %201 = vst [vmem:[#allocation8] sm:$0xff] %v200_v44 }
 0x175   :  { %327 = shalt.err (!%p324_p6)
}
 0x176   :  { %s328_s20 = scalar_lea.hbm %s429_s4, 128 }
 0x177   :  { %p329_p7 = scmp.ne.s32.totalorder %s429_s4, %s328_s20  ;;  %p332_p8 = scmp.lt.u32.totalorder %s328_s20, %s429_s4 }
 0x179   :  { %p334_p9 = pnand %p332_p8, %p329_p7 }
 0x17b   :  { %337 = shalt.err (!%p334_p9)
}
 0x17c   :  { %211 = dma.vmem_to_hbm [thread:$0]  %s209_s18, 128, %s429_s4, [#allocation5]  }
 0x17d   :  { %342 = dma.done.wait [#allocation5], 128  }
 0x17e   :  { %343 = vsyncadd [#allocation5], 4294967168 }
 0x17f   :  { %215 = vsyncpa [#allocation4], 1 }
 0x180   :  { %216 = vsyncpa [#allocation7], 1 }
 0x181   :  { %217 = vsyncpa [#allocation5], 1 }

</bundles_post_ra>
